<compile_context>
chip_gen: v7x
topology: tpu7x:2x2x1
jax: 0.10.0
libtpu: 0.0.40
codegen_flags: <defaults>
</compile_context>

<pallas_src>
import numpy as np
import jax
import jax.numpy as jnp
from jax import lax
from jax.experimental import pallas as pl
from jax.experimental.pallas import tpu as pltpu

LANES = 128  # lane-dense width for the bend axis (padded, sliced in wrapper)


def _make_bezier_kernel(num_bends: int):
    """Kernel closure: all curve constants are baked at trace time."""
    n = num_bends - 1  # curve degree

    def kernel(t_ref, o_ref):
        t = t_ref[...]                                    # [TILE_B, 1]
        shape = (t.shape[0], LANES)
        tb = jnp.broadcast_to(t, shape)                   # t along lanes
        ub = 1.0 - tb                                     # (1 - t)
        k = lax.broadcasted_iota(jnp.int32, shape, 1)     # bend index per lane
        rev = n - k                                       # reversed exponent

        t_pow = jnp.ones(shape, jnp.float32)              # -> t**k
        u_pow = jnp.ones(shape, jnp.float32)              # -> (1-t)**(n-k)
        binom = jnp.ones(shape, jnp.float32)              # -> C(n,k); 0 for k>n

        # Static unrolled loop: pure mul + select on the VPU's 4 VALU slots.
        for i in range(n):
            t_pow = jnp.where(k > i, t_pow * tb, t_pow)
            u_pow = jnp.where(rev > i, u_pow * ub, u_pow)
            binom = jnp.where(k > i, binom * (float(n - i) / float(i + 1)), binom)

        o_ref[...] = binom * t_pow * u_pow

    return kernel


def bezier_forward(t, num_bends):
    """t: [B, 1] float32 -> [B, num_bends] float32 (torch broadcasting)."""
    t = jnp.asarray(t, jnp.float32)
    B = t.shape[0]

    # Tile the batch: tiny batches pad to one 8-row tile; big batches use
    # 512-row tiles (double-buffered (512,1)+(512,128) f32 is < 0.3 MiB,
    # safely inside v7x's 64 MiB VMEM).
    tile_b = 512 if B >= 512 else 8
    b_pad = ((B + tile_b - 1) // tile_b) * tile_b
    if b_pad != B:
        t = jnp.pad(t, ((0, b_pad - B), (0, 0)))

    out = pl.pallas_call(
        _make_bezier_kernel(num_bends),
        out_shape=jax.ShapeDtypeStruct((b_pad, LANES), jnp.float32),
        grid=(b_pad // tile_b,),
        in_specs=[pl.BlockSpec((tile_b, 1), lambda i: (i, 0))],
        out_specs=pl.BlockSpec((tile_b, LANES), lambda i: (i, 0)),
        compiler_params=pltpu.CompilerParams(
            dimension_semantics=("parallel",)),
    )(t)
    return out[:B, :num_bends]


class BezierJax:
    """Deterministic re-implementation of the PyTorch Bezier module."""

    def __init__(self, num_bends):
        self.num_bends = int(num_bends)

    def __call__(self, t):
        t = jnp.asarray(t, jnp.float32)
        scalar = t.ndim == 0
        if scalar:
            t = t.reshape(1, 1)
        out = bezier_forward(t, self.num_bends)
        return out[0] if scalar else out


if __name__ == "__main__":
    num_bends = 5
    B = 8

    key = jax.random.PRNGKey(0)
    t_rand = jax.random.uniform(key, (B - 2, 1), dtype=jnp.float32)
    # Include the endpoints t=0 and t=1 (the NaN-prone values under float pow;
    # exact with the integer-exponent formulation).
    t = jnp.concatenate(
        [jnp.array([[0.0], [1.0]], dtype=jnp.float32), t_rand], axis=0
    )

    curve = BezierJax(num_bends)
    out = jax.block_until_ready(curve(t))

    # Pure-numpy reference: exact binomials, integer-exponent powers.
    from math import comb
    n = num_bends - 1
    ks = np.arange(num_bends)
    binom_ref = np.array([comb(n, int(k)) for k in ks], dtype=np.float64)
    t_np = np.asarray(t, dtype=np.float64)
    ref = (
        binom_ref[None, :]
        * np.power(t_np, ks[None, :])
        * np.power(1.0 - t_np, (n - ks)[None, :])
    )

    assert out.shape == (B, num_bends)
    assert np.allclose(np.asarray(out, np.float64), ref, rtol=1e-5, atol=1e-6)

    print("KERNEL_OK")
</pallas_src>

<mosaic_0001>
module attributes {stable_mosaic.version = 11 : i64} {
  func.func @kernel(%arg0: i32, %arg1: memref<8x1xf32, #tpu.memory_space<vmem>>, %arg2: memref<8x128xf32, #tpu.memory_space<vmem>>) attributes {dimension_semantics = [#tpu.dimension_semantics<parallel>], iteration_bounds = array<i64: 1>, scalar_prefetch = 0 : i64, scratch_operands = 0 : i64, tpu.core_type = #tpu.core_type<tc>, window_params = [{transform_indices = @transform_0, window_bounds = array<i64: 8, 1>}, {transform_indices = @transform_1, window_bounds = array<i64: 8, 128>}]} {
    %c0 = arith.constant 0 : index
    %c0_0 = arith.constant 0 : index
    %0 = vector.load %arg1[%c0, %c0_0] : memref<8x1xf32, #tpu.memory_space<vmem>>, vector<8x1xf32>
    %1 = vector.shape_cast %0 : vector<8x1xf32> to vector<8x1xf32>
    %2 = vector.broadcast %1 : vector<8x1xf32> to vector<8x128xf32>
    %cst = arith.constant 1.000000e+00 : f32
    %3 = vector.broadcast %cst : f32 to vector<8x128xf32>
    %4 = arith.subf %3, %2 : vector<8x128xf32>
    %5 = tpu.iota {dimensions = array<i32: 1>} : vector<8x128xi32>
    %c4_i32 = arith.constant 4 : i32
    %6 = vector.broadcast %c4_i32 : i32 to vector<8x128xi32>
    %7 = arith.subi %6, %5 : vector<8x128xi32>
    %cst_1 = arith.constant 1.000000e+00 : f32
    %8 = vector.broadcast %cst_1 : f32 to vector<8x128xf32>
    %cst_2 = arith.constant 1.000000e+00 : f32
    %9 = vector.broadcast %cst_2 : f32 to vector<8x128xf32>
    %cst_3 = arith.constant 1.000000e+00 : f32
    %10 = vector.broadcast %cst_3 : f32 to vector<8x128xf32>
    %c0_i32 = arith.constant 0 : i32
    %11 = vector.broadcast %c0_i32 : i32 to vector<8x128xi32>
    %12 = arith.cmpi sgt, %5, %11 : vector<8x128xi32>
    %13 = arith.mulf %8, %2 : vector<8x128xf32>
    %14 = arith.select %12, %13, %8 : vector<8x128xi1>, vector<8x128xf32>
    %c0_i32_4 = arith.constant 0 : i32
    %15 = vector.broadcast %c0_i32_4 : i32 to vector<8x128xi32>
    %16 = arith.cmpi sgt, %7, %15 : vector<8x128xi32>
    %17 = arith.mulf %9, %4 : vector<8x128xf32>
    %18 = arith.select %16, %17, %9 : vector<8x128xi1>, vector<8x128xf32>
    %c0_i32_5 = arith.constant 0 : i32
    %19 = vector.broadcast %c0_i32_5 : i32 to vector<8x128xi32>
    %20 = arith.cmpi sgt, %5, %19 : vector<8x128xi32>
    %cst_6 = arith.constant 4.000000e+00 : f32
    %21 = vector.broadcast %cst_6 : f32 to vector<8x128xf32>
    %22 = arith.mulf %10, %21 : vector<8x128xf32>
    %23 = arith.select %20, %22, %10 : vector<8x128xi1>, vector<8x128xf32>
    %c1_i32 = arith.constant 1 : i32
    %24 = vector.broadcast %c1_i32 : i32 to vector<8x128xi32>
    %25 = arith.cmpi sgt, %5, %24 : vector<8x128xi32>
    %26 = arith.mulf %14, %2 : vector<8x128xf32>
    %27 = arith.select %25, %26, %14 : vector<8x128xi1>, vector<8x128xf32>
    %c1_i32_7 = arith.constant 1 : i32
    %28 = vector.broadcast %c1_i32_7 : i32 to vector<8x128xi32>
    %29 = arith.cmpi sgt, %7, %28 : vector<8x128xi32>
    %30 = arith.mulf %18, %4 : vector<8x128xf32>
    %31 = arith.select %29, %30, %18 : vector<8x128xi1>, vector<8x128xf32>
    %c1_i32_8 = arith.constant 1 : i32
    %32 = vector.broadcast %c1_i32_8 : i32 to vector<8x128xi32>
    %33 = arith.cmpi sgt, %5, %32 : vector<8x128xi32>
    %cst_9 = arith.constant 1.500000e+00 : f32
    %34 = vector.broadcast %cst_9 : f32 to vector<8x128xf32>
    %35 = arith.mulf %23, %34 : vector<8x128xf32>
    %36 = arith.select %33, %35, %23 : vector<8x128xi1>, vector<8x128xf32>
    %c2_i32 = arith.constant 2 : i32
    %37 = vector.broadcast %c2_i32 : i32 to vector<8x128xi32>
    %38 = arith.cmpi sgt, %5, %37 : vector<8x128xi32>
    %39 = arith.mulf %27, %2 : vector<8x128xf32>
    %40 = arith.select %38, %39, %27 : vector<8x128xi1>, vector<8x128xf32>
    %c2_i32_10 = arith.constant 2 : i32
    %41 = vector.broadcast %c2_i32_10 : i32 to vector<8x128xi32>
    %42 = arith.cmpi sgt, %7, %41 : vector<8x128xi32>
    %43 = arith.mulf %31, %4 : vector<8x128xf32>
    %44 = arith.select %42, %43, %31 : vector<8x128xi1>, vector<8x128xf32>
    %c2_i32_11 = arith.constant 2 : i32
    %45 = vector.broadcast %c2_i32_11 : i32 to vector<8x128xi32>
    %46 = arith.cmpi sgt, %5, %45 : vector<8x128xi32>
    %cst_12 = arith.constant 0.666666686 : f32
    %47 = vector.broadcast %cst_12 : f32 to vector<8x128xf32>
    %48 = arith.mulf %36, %47 : vector<8x128xf32>
    %49 = arith.select %46, %48, %36 : vector<8x128xi1>, vector<8x128xf32>
    %c3_i32 = arith.constant 3 : i32
    %50 = vector.broadcast %c3_i32 : i32 to vector<8x128xi32>
    %51 = arith.cmpi sgt, %5, %50 : vector<8x128xi32>
    %52 = arith.mulf %40, %2 : vector<8x128xf32>
    %53 = arith.select %51, %52, %40 : vector<8x128xi1>, vector<8x128xf32>
    %c3_i32_13 = arith.constant 3 : i32
    %54 = vector.broadcast %c3_i32_13 : i32 to vector<8x128xi32>
    %55 = arith.cmpi sgt, %7, %54 : vector<8x128xi32>
    %56 = arith.mulf %44, %4 : vector<8x128xf32>
    %57 = arith.select %55, %56, %44 : vector<8x128xi1>, vector<8x128xf32>
    %c3_i32_14 = arith.constant 3 : i32
    %58 = vector.broadcast %c3_i32_14 : i32 to vector<8x128xi32>
    %59 = arith.cmpi sgt, %5, %58 : vector<8x128xi32>
    %cst_15 = arith.constant 2.500000e-01 : f32
    %60 = vector.broadcast %cst_15 : f32 to vector<8x128xf32>
    %61 = arith.mulf %49, %60 : vector<8x128xf32>
    %62 = arith.select %59, %61, %49 : vector<8x128xi1>, vector<8x128xf32>
    %63 = arith.mulf %62, %53 : vector<8x128xf32>
    %64 = arith.mulf %63, %57 : vector<8x128xf32>
    %c0_16 = arith.constant 0 : index
    %c0_17 = arith.constant 0 : index
    %65 = vector.load %arg2[%c0_16, %c0_17] : memref<8x128xf32, #tpu.memory_space<vmem>>, vector<8x128xf32>
    tpu.vector_store %arg2[%c0_16, %c0_17], %64 {strides = array<i32>} : memref<8x128xf32, #tpu.memory_space<vmem>>, vector<8x128xf32>,
    return
  }
  func.func @transform_0(%arg0: i32) -> (i32, i32) {
    %c0_i32 = arith.constant 0 : i32
    %c0_i32_0 = arith.constant 0 : i32
    return %arg0, %c0_i32 : i32, i32
  }
  func.func @transform_1(%arg0: i32) -> (i32, i32) {
    %c0_i32 = arith.constant 0 : i32
    %c0_i32_0 = arith.constant 0 : i32
    return %arg0, %c0_i32 : i32, i32
  }
}

</mosaic_0001>

<bundles_post_ra>
// kernel: tpu_custom_call.1
= control target key start
LH: loop header
LB: loop body
LE: loop exit
PB: predicated region body
PF: predicated region fallthrough
CT: control target
= control target key end

     0   :  { %s123_s0 = inlined_call_operand.vmem [shape: f32[8,1], index: 0, kind: input, shape index: {}]   ;;  %s124_s1 = inlined_call_operand.hbm [shape: f32[8,128], index: 1, kind: output, shape index: {}]  }
   0x1   :  { %v9_v0 = vld [vmem:[%s123_s0] sm:$0xff] }
   0x2   :  { %6 = vsyncpa [#allocation3], 0  ;;  %v93_v1 = vmov 0   ;;  %v16_v2 = vlaneseq  ;;  %v94_v4 = vmov 1.0   ;;  %s95_s0 = smov [#allocation2]  }
   0x3   :  { %68 = vset.pattern.permute.xlu0 %v93_v1  ;;  %s57_s8 = sshll.u32 %s95_s0, 4  ;;  %s58_s8 = int_to_ptr.vmem [resolvable:$true] %s57_s8 }
   0x4   :  { %12 = vperm.xlu0 %68, %v9_v0   ;;  %v17_v3 = vand.u32 127, %v16_v2  ;;  %s69_s9 = scalar_lea.vmem %s58_s8, 128  ;;  %p74_p1 = scmp.lt.s32.totalorder %s58_s8, %s58_s8 }
   0x5   :  { %p70_p0 = scmp.ne.s32.totalorder %s58_s8, %s69_s9  ;;  %p75_p2 = scmp.lt.s32.totalorder %s69_s9, %s69_s9 }
   0x6   :  { %vm19_vm0 = vcmp.gt.s32.totalorder %v17_v3, 0  ;;  %vm24_vm1 = vcmp.gt.s32.totalorder %v17_v3, 1  ;;  %v18_v8 = vsub.s32 4, %v17_v3  ;;  %vm32_vm2 = vcmp.gt.s32.totalorder %v17_v3, 2 }
   0x7   :  { %v23_v5 = vsel %vm19_vm0, 4.0, %v94_v4  ;;  %vm40_vm5 = vcmp.gt.s32.totalorder %v17_v3, 3  ;;  %p76_p3 = por %p75_p2, %p74_p1 }
   0x8   :  { %v30_v6 = vmul.f32 1.5, %v23_v5  ;;  %vm21_vm3 = vcmp.gt.s32.totalorder %v18_v8, 0  ;;  %vm27_vm4 = vcmp.gt.s32.totalorder %v18_v8, 1  ;;  %vm35_vm6 = vcmp.gt.s32.totalorder %v18_v8, 2 }
   0x9   :  { %vm43_vm7 = vcmp.gt.s32.totalorder %v18_v8, 3  ;;  %p77_p4 = pnand %p76_p3, %p70_p0 }
   0xa   :  { %v31_v7 = vsel %vm24_vm1, %v30_v6, %v23_v5 }
   0xb   :  { %v38_v9 = vmul.f32 0.6666667, %v31_v7 }
   0xd   :  { %v39_v13 = vsel %vm32_vm2, %v38_v9, %v31_v7 }
   0xe   :  { %v46_v18 = vmul.f32 0.25, %v39_v13 }
  0x10   :  { %v47_v24 = vsel %vm40_vm5, %v46_v18, %v39_v13 }
  0x83   :  { %v13_v10 = vpop.permute.xlu0 %12 }
  0x84   :  { %v15_v11 = vsub.f32 1.0, %v13_v10  ;;  %v20_v12 = vsel %vm19_vm0, %v13_v10, 1.0 }
  0x85   :  { %v25_v14 = vmul.f32 %v20_v12, %v13_v10 }
  0x86   :  { %v22_v15 = vsel %vm21_vm3, %v15_v11, 1.0 }
  0x87   :  { %v26_v16 = vsel %vm24_vm1, %v25_v14, %v20_v12  ;;  %v28_v17 = vmul.f32 %v22_v15, %v15_v11 }
  0x88   :  { %v33_v19 = vmul.f32 %v26_v16, %v13_v10 }
  0x89   :  { %v29_v20 = vsel %vm27_vm4, %v28_v17, %v22_v15 }
  0x8a   :  { %v34_v21 = vsel %vm32_vm2, %v33_v19, %v26_v16  ;;  %v36_v22 = vmul.f32 %v29_v20, %v15_v11 }
  0x8b   :  { %v41_v23 = vmul.f32 %v34_v21, %v13_v10 }
  0x8c   :  { %v37_v25 = vsel %vm35_vm6, %v36_v22, %v29_v20 }
  0x8d   :  { %v42_v26 = vsel %vm40_vm5, %v41_v23, %v34_v21  ;;  %v44_v27 = vmul.f32 %v37_v25, %v15_v11 }
  0x8e   :  { %v48_v28 = vmul.f32 %v47_v24, %v42_v26 }
  0x8f   :  { %v45_v29 = vsel %vm43_vm7, %v44_v27, %v37_v25 }
  0x90   :  { %v49_v30 = vmul.f32 %v48_v28, %v45_v29 }
  0x92   :  { %50 = vst [vmem:[#allocation2] sm:$0xff] %v49_v30 }
  0x93   :  { %80 = shalt.err (!%p77_p4)
}
  0x94   :  { %s81_s12 = scalar_lea.hbm %s124_s1, 128 }
  0x95   :  { %p82_p5 = scmp.ne.s32.totalorder %s124_s1, %s81_s12  ;;  %p85_p6 = scmp.lt.u32.totalorder %s81_s12, %s124_s1 }
  0x97   :  { %p87_p7 = pnand %p85_p6, %p82_p5 }
  0x99   :  { %90 = shalt.err (!%p87_p7)
}
  0x9a   :  { %60 = dma.vmem_to_hbm [thread:$0]  %s58_s8, 128, %s124_s1, [#allocation3]  }
  0x9b   :  { %91 = dma.done.wait [#allocation3], 128  }
  0x9c   :  { %92 = vsyncadd [#allocation3], 4294967168 }
  0x9d   :  { %64 = vsyncpa [#allocation3], 1 }

</bundles_post_ra>
